<compile_context>
chip_gen: v7x
topology: tpu7x:2x2x1
jax: 0.10.0
libtpu: 0.0.40
codegen_flags: <defaults>
</compile_context>

<pallas_src>
import math

import jax
import jax.numpy as jnp
from jax.experimental import pallas as pl
from jax.experimental.pallas import tpu as pltpu

SMOOTHING = 0.1


def _round_up(x, m):
    return ((x + m - 1) // m) * m


def _vmem_params():
    """Returns (per-block logits byte budget, mosaic vmem_limit_bytes)."""
    try:
        cap = int(pltpu.get_tpu_info().vmem_capacity_bytes)
    except Exception:
        cap = None
    if cap is not None and cap > (64 << 20):
        # v5e / v6e: 128 MiB VMEM -> larger double-buffered logits blocks.
        return 8 << 20, 56 << 20
    # v7x-class (64 MiB physical / 32 MiB scoped default) or unknown: conservative.
    return 5 << 20, 40 << 20


def _make_kernel(b_total, c, tb, on, off):
    def kernel(x_ref, tgt_ref, out_ref):
        pid = pl.program_id(0)
        x = x_ref[...].astype(jnp.float32)                    # (tb, C) logits
        tgt = tgt_ref[...]                                    # (tb, 1) int32 labels

        # Row-wise logsumexp pieces (no (tb, C) logp materialized).
        m = jnp.max(x, axis=1, keepdims=True)                 # (tb, 1)   XLU
        se = jnp.sum(jnp.exp(x - m), axis=1, keepdims=True)   # EUP + XLU
        mlse = m + jnp.log(se)                                # one log per row

        # Single fused weighted reduce: sum_c t_c * x_c with t in {on, off}.
        cls = jax.lax.broadcasted_iota(jnp.int32, (1, c), 1)  # (1, C) lane iota
        w = jnp.where(cls == tgt, on, off)                    # (tb, C) via broadcast
        wsum = jnp.sum(w * x, axis=1, keepdims=True)          # (tb, 1)

        # sum_c t*logp per row; since sum_c t == 1 this is wsum - logsumexp.
        row_cross = wsum - mlse

        # Mask rows past the true batch (ragged last block reads unspecified data);
        # keep this as the last op before the reduce/store.
        rows = pid * tb + jax.lax.broadcasted_iota(jnp.int32, (tb, 1), 0)
        masked = jnp.where(rows < b_total, row_cross, 0.0)

        # One partial sum per tile, stored lane-dense (full 128-lane vector store).
        ts = jnp.sum(masked, axis=0, keepdims=True)           # (1, 1)
        out_ref[...] = jnp.broadcast_to(ts.reshape(1, 1, 1), (1, 1, 128))

    return kernel


def label_smoothing_loss(outputs, targets, smoothing=SMOOTHING, block_rows=None):
    """outputs: (B, C) float logits (f32 or bf16); targets: (B,) ints -> scalar f32."""
    B, C = outputs.shape
    on = 1.0 - smoothing
    off = smoothing / (C - 1)

    # Entropy constant sum_{b,c} t*log t, computed at trace time (guards log(0)).
    ent = (on * math.log(on) if on > 0.0 else 0.0) + \
          ((C - 1) * off * math.log(off) if off > 0.0 else 0.0)
    h_const = B * ent

    itemsize = jnp.dtype(outputs.dtype).itemsize
    sub = {1: 32, 2: 16, 4: 8}.get(itemsize, 8)   # packed-dtype sublane minimum
    budget, vmem_limit = _vmem_params()

    # Batch tile: sized by bytes only; >= 2 tiles when possible (v7x megacore).
    if block_rows is not None:
        tb = min(B, _round_up(block_rows, sub))
    elif B <= sub:
        tb = B
    else:
        rows = max(sub, (budget // (C * itemsize)) // sub * sub)
        two_tiles = _round_up(pl.cdiv(B, 2), sub)
        tb = min(rows, two_tiles, B)
    num_tiles = pl.cdiv(B, tb)

    tgt2 = targets.astype(jnp.int32).reshape(B, 1)

    # No wrapper-side padding: the grid covers ceil(B / tb) and the in-kernel row
    # mask neutralizes the ragged last block.
    # TODO(synk): for vocab-scale C add an inner "arbitrary" grid axis over C with
    # online logsumexp + running weighted-sum accumulators in VMEM scratch.
    cross = pl.pallas_call(
        _make_kernel(B, C, tb, on, off),
        out_shape=jax.ShapeDtypeStruct((num_tiles, 1, 128), jnp.float32),
        grid=(num_tiles,),
        in_specs=[
            pl.BlockSpec((tb, C), lambda i: (i, 0)),
            pl.BlockSpec((tb, 1), lambda i: (i, 0)),
        ],
        out_specs=pl.BlockSpec((1, 1, 128), lambda i: (i, 0, 0)),
        compiler_params=pltpu.CompilerParams(
            dimension_semantics=("parallel",),
            vmem_limit_bytes=vmem_limit,
        ),
    )(outputs, tgt2)

    # loss = mean_{b,c} t*(log t - logp) = (sum t*log t - sum t*logp) / (B*C)
    total_cross = jnp.sum(cross[:, 0, 0])
    return (h_const - total_cross) / jnp.float32(B * C)


def _reference_loss(outputs, targets, smoothing=SMOOTHING):
    # Pure-JAX reference mirroring the PyTorch code.
    B, C = outputs.shape
    logp = jax.nn.log_softmax(outputs.astype(jnp.float32), axis=1)
    t = jnp.full((B, C), smoothing / (C - 1), dtype=jnp.float32)
    t = t.at[jnp.arange(B), targets].set(1.0 - smoothing)
    return jnp.mean(t * (jnp.log(t) - logp))


if __name__ == "__main__":
    key = jax.random.PRNGKey(0)
    k1, k2, k3, k4 = jax.random.split(key, 4)

    # Case 1: single tile covers the whole batch (f32).
    B, C = 8, 32
    outputs = jax.random.normal(k1, (B, C), dtype=jnp.float32)
    targets = jax.random.randint(k2, (B,), 0, C, dtype=jnp.int32)
    loss = label_smoothing_loss(outputs, targets)
    jax.block_until_ready(loss)
    ref = _reference_loss(outputs, targets)
    assert jnp.allclose(loss, ref, atol=1e-4, rtol=1e-4), (loss, ref)

    # Case 2: multi-tile grid + ragged (unpadded) last block, f32 (B=20, 8-row tiles).
    B2, C2 = 20, 48
    outputs2 = jax.random.normal(k3, (B2, C2), dtype=jnp.float32)
    targets2 = jax.random.randint(k4, (B2,), 0, C2, dtype=jnp.int32)
    loss2 = label_smoothing_loss(outputs2, targets2, block_rows=8)
    jax.block_until_ready(loss2)
    ref2 = _reference_loss(outputs2, targets2)
    assert jnp.allclose(loss2, ref2, atol=1e-4, rtol=1e-4), (loss2, ref2)

    # Case 3: bf16 logits passed straight through (16-row sublane-aligned tiles), ragged.
    outputs3 = outputs2.astype(jnp.bfloat16)
    loss3 = label_smoothing_loss(outputs3, targets2, block_rows=16)
    jax.block_until_ready(loss3)
    ref3 = _reference_loss(outputs3, targets2)
    assert jnp.allclose(loss3, ref3, atol=1e-3, rtol=1e-3), (loss3, ref3)

    print("KERNEL_OK")
</pallas_src>

<mosaic_0001>
module attributes {stable_mosaic.version = 11 : i64} {
  func.func @kernel(%arg0: i32, %arg1: memref<8x32xf32, #tpu.memory_space<vmem>>, %arg2: memref<8x1xi32, #tpu.memory_space<vmem>>, %arg3: memref<1x1x128xf32, #tpu.memory_space<vmem>>) attributes {dimension_semantics = [#tpu.dimension_semantics<parallel>], iteration_bounds = array<i64: 1>, scalar_prefetch = 0 : i64, scratch_operands = 0 : i64, tpu.core_type = #tpu.core_type<tc>, window_params = [{transform_indices = @transform_0, window_bounds = array<i64: 8, 32>}, {transform_indices = @transform_1, window_bounds = array<i64: 8, 1>}, {transform_indices = @transform_2, window_bounds = array<i64: 1, 1, 128>}]} {
    %c0 = arith.constant 0 : index
    %c0_0 = arith.constant 0 : index
    %0 = vector.load %arg1[%c0, %c0_0] : memref<8x32xf32, #tpu.memory_space<vmem>>, vector<8x32xf32>
    %c0_1 = arith.constant 0 : index
    %c0_2 = arith.constant 0 : index
    %1 = vector.load %arg2[%c0_1, %c0_2] : memref<8x1xi32, #tpu.memory_space<vmem>>, vector<8x1xi32>
    %cst = arith.constant dense<0xFF800000> : vector<8xf32>
    %2 = vector.multi_reduction <maximumf>, %0, %cst [1] : vector<8x32xf32> to vector<8xf32>
    %3 = vector.shape_cast %2 : vector<8xf32> to vector<8x1xf32>
    %4 = vector.broadcast %3 : vector<8x1xf32> to vector<8x32xf32>
    %5 = arith.subf %0, %4 : vector<8x32xf32>
    %6 = math.exp %5 : vector<8x32xf32>
    %cst_3 = arith.constant dense<0.000000e+00> : vector<8xf32>
    %7 = vector.multi_reduction <add>, %6, %cst_3 [1] : vector<8x32xf32> to vector<8xf32>
    %8 = vector.shape_cast %7 : vector<8xf32> to vector<8x1xf32>
    %9 = math.log %8 : vector<8x1xf32>
    %10 = arith.addf %3, %9 : vector<8x1xf32>
    %11 = tpu.iota {dimensions = array<i32: 1>} : vector<1x32xi32>
    %12 = vector.broadcast %11 : vector<1x32xi32> to vector<8x32xi32>
    %13 = vector.broadcast %1 : vector<8x1xi32> to vector<8x32xi32>
    %14 = arith.cmpi eq, %12, %13 : vector<8x32xi32>
    %cst_4 = arith.constant 0.899999976 : f32
    %cst_5 = arith.constant 0.0032258064 : f32
    %15 = vector.broadcast %cst_4 : f32 to vector<8x32xf32>
    %16 = vector.broadcast %cst_5 : f32 to vector<8x32xf32>
    %17 = arith.select %14, %15, %16 : vector<8x32xi1>, vector<8x32xf32>
    %18 = arith.mulf %17, %0 : vector<8x32xf32>
    %cst_6 = arith.constant dense<0.000000e+00> : vector<8xf32>
    %19 = vector.multi_reduction <add>, %18, %cst_6 [1] : vector<8x32xf32> to vector<8xf32>
    %20 = vector.shape_cast %19 : vector<8xf32> to vector<8x1xf32>
    %21 = arith.subf %20, %10 : vector<8x1xf32>
    %c8_i32 = arith.constant 8 : i32
    %22 = arith.muli %arg0, %c8_i32 : i32
    %23 = tpu.iota {dimensions = array<i32: 0>} : vector<8x1xi32>
    %24 = vector.broadcast %22 : i32 to vector<8x1xi32>
    %25 = arith.addi %24, %23 : vector<8x1xi32>
    %c8_i32_7 = arith.constant 8 : i32
    %26 = vector.broadcast %c8_i32_7 : i32 to vector<8x1xi32>
    %27 = arith.cmpi slt, %25, %26 : vector<8x1xi32>
    %cst_8 = arith.constant 0.000000e+00 : f32
    %28 = vector.broadcast %cst_8 : f32 to vector<8x1xf32>
    %29 = arith.select %27, %21, %28 : vector<8x1xi1>, vector<8x1xf32>
    %cst_9 = arith.constant dense<0.000000e+00> : vector<1xf32>
    %30 = vector.multi_reduction <add>, %29, %cst_9 [0] : vector<8x1xf32> to vector<1xf32>
    %31 = vector.shape_cast %30 : vector<1xf32> to vector<1x1xf32>
    %32 = vector.shape_cast %31 : vector<1x1xf32> to vector<1x1x1xf32>
    %33 = vector.shape_cast %32 : vector<1x1x1xf32> to vector<1x1x1xf32>
    %34 = vector.broadcast %33 : vector<1x1x1xf32> to vector<1x1x128xf32>
    %c0_10 = arith.constant 0 : index
    %c0_11 = arith.constant 0 : index
    %c0_12 = arith.constant 0 : index
    %35 = vector.load %arg3[%c0_10, %c0_11, %c0_12] : memref<1x1x128xf32, #tpu.memory_space<vmem>>, vector<1x1x128xf32>
    tpu.vector_store %arg3[%c0_10, %c0_11, %c0_12], %34 {strides = array<i32>} : memref<1x1x128xf32, #tpu.memory_space<vmem>>, vector<1x1x128xf32>,
    return
  }
  func.func @transform_0(%arg0: i32) -> (i32, i32) {
    %c0_i32 = arith.constant 0 : i32
    %c0_i32_0 = arith.constant 0 : i32
    return %arg0, %c0_i32 : i32, i32
  }
  func.func @transform_1(%arg0: i32) -> (i32, i32) {
    %c0_i32 = arith.constant 0 : i32
    %c0_i32_0 = arith.constant 0 : i32
    return %arg0, %c0_i32 : i32, i32
  }
  func.func @transform_2(%arg0: i32) -> (i32, i32, i32) {
    %c0_i32 = arith.constant 0 : i32
    %c0_i32_0 = arith.constant 0 : i32
    %c0_i32_1 = arith.constant 0 : i32
    return %arg0, %c0_i32, %c0_i32_0 : i32, i32, i32
  }
}

</mosaic_0001>

<bundles_post_ra>
// kernel: tpu_custom_call.1
= control target key start
LH: loop header
LB: loop body
LE: loop exit
PB: predicated region body
PF: predicated region fallthrough
CT: control target
= control target key end

     0   :  { %vm14_vm0 = vcmask 261120   ;;  %s138_s0 = inlined_call_operand.vmem [shape: f32[8,32], index: 0, kind: input, shape index: {}]   ;;  %s139_s1 = inlined_call_operand.vmem [shape: s32[8,1], index: 1, kind: input, shape index: {}]   ;;  %s140_s2 = inlined_call_operand.hbm [shape: f32[1,1,128], index: 2, kind: output, shape index: {}]  }
   0x1   :  { %v12_v0 = vld [vmem:[%s138_s0] sm:$0xff] }
   0x2   :  { %7 = vsyncpa [#allocation3], 0  ;;  %v15_v1 = vsel %vm14_vm0, %v12_v0, -inf  ;;  %v99_v2 = vmov 0   ;;  %v13_v3 = vld [vmem:[%s139_s1] sm:$0xff]  ;;  %v27_v6 = vlaneseq  ;;  %s101_s0 = smov [#allocation2]  }
   0x3   :  { %70 = vset.pattern.permute.xlu0 %v99_v2  ;;  %v100_v10 = vmov 0.0032258064   ;;  %s59_s1 = sshll.u32 %s101_s0, 4  ;;  %s60_s1 = int_to_ptr.vmem [resolvable:$true] %s59_s1 }
   0x4   :  { %16 = vmax.xlane.f32.xlu0 %v15_v1  ;;  %v28_v8 = vand.u32 127, %v27_v6  ;;  %s75_s13 = scalar_lea.vmem %s60_s1, 16  ;;  %s79_s14 = scalar_lea.vmem %s60_s1, 32 }
   0x5   :  { %p76_p0 = scmp.ne.s32.totalorder %s60_s1, %s75_s13  ;;  %p80_p1 = scmp.lt.s32.totalorder %s60_s1, %s60_s1 }
   0x6   :  { %p81_p2 = scmp.lt.s32.totalorder %s79_s14, %s75_s13 }
   0x8   :  { %p82_p3 = por %p81_p2, %p80_p1 }
   0xa   :  { %p83_p4 = pnand %p82_p3, %p76_p0 }
  0x1a   :  { %30 = vperm.xlu0 %70, %v13_v3  }
  0x91   :  { %v17_v4 = vpop.xlane.xlu0 %16 }
  0x92   :  { %v18_v5 = vsub.f32 %v12_v0, %v17_v4 }
  0x94   :  { %v19_v7 = vmul.f32 1.442695, %v18_v5 }
  0x96   :  { %71 = vpow2.f32 %v19_v7 }
  0x99   :  { %v31_v9 = vpop.permute.xlu0 %30 }
  0x9a   :  { %vm32_vm1 = vcmp.eq.s32.totalorder %v28_v8, %v31_v9 }
  0x9b   :  { %v33_v11 = vsel %vm32_vm1, 0.9, %v100_v10 }
  0x9c   :  { %v34_v12 = vmul.f32 %v33_v11, %v12_v0 }
  0x9e   :  { %v35_v15 = vsel %vm14_vm0, %v34_v12, 0.0 }
  0xa0   :  { %v72_v13 = vpop.eup %71 }
  0xa1   :  { %v21_v14 = vsel %vm14_vm0, %v72_v13, 0.0 }
  0xa2   :  { %22 = vadd.xlane.f32.xlu1 %v21_v14 }
  0xa6   :  { %36 = vadd.xlane.f32.xlu1 %v35_v15 }
 0x12f   :  { %v23_v16 = vpop.xlane.xlu1 %22 }
 0x130   :  { %73 = vlog2.f32 %v23_v16 }
 0x133   :  { %v37_v19 = vpop.xlane.xlu1 %36 }
 0x13a   :  { %v74_v17 = vpop.eup %73 }
 0x13b   :  { %v25_v18 = vmul.f32 0.6931472, %v74_v17 }
 0x13d   :  { %v26_v20 = vadd.f32 %v25_v18, %v17_v4 }
 0x13f   :  { %v38_v21 = vsub.f32 %v37_v19, %v26_v20 }
 0x141   :  { %v46_v22 = vrot.slane %v38_v21, 4 }
 0x143   :  { %v47_v23 = vadd.f32 %v46_v22, %v38_v21 }
 0x145   :  { %v48_v24 = vrot.slane %v47_v23, 2 }
 0x147   :  { %v49_v25 = vadd.f32 %v48_v24, %v47_v23 }
 0x149   :  { %v50_v26 = vrot.slane %v49_v25, 1 }
 0x14b   :  { %v51_v27 = vadd.f32 %v50_v26, %v49_v25 }
 0x14d   :  { %52 = vst [vmem:[#allocation2] sm:$0x1] %v51_v27 }
 0x14e   :  { %86 = shalt.err (!%p83_p4)
}
 0x14f   :  { %s87_s17 = scalar_lea.hbm %s140_s2, 16 }
 0x150   :  { %p88_p5 = scmp.ne.s32.totalorder %s140_s2, %s87_s17  ;;  %p91_p6 = scmp.lt.u32.totalorder %s87_s17, %s140_s2 }
 0x152   :  { %p93_p7 = pnand %p91_p6, %p88_p5 }
 0x154   :  { %96 = shalt.err (!%p93_p7)
}
 0x155   :  { %62 = dma.vmem_to_hbm [thread:$0]  %s60_s1, 16, %s140_s2, [#allocation3]  }
 0x156   :  { %97 = dma.done.wait [#allocation3], 16  }
 0x157   :  { %98 = vsyncadd [#allocation3], 4294967280 }
 0x158   :  { %66 = vsyncpa [#allocation3], 1 }

</bundles_post_ra>
